<compile_context>
chip_gen: v7x
topology: tpu7x:2x2x1
jax: 0.10.0
libtpu: 0.0.40
codegen_flags: <defaults>
</compile_context>

<pallas_src>
import functools

import jax
import jax.numpy as jnp
from jax.experimental import pallas as pl
from jax.experimental.pallas import tpu as pltpu


def _round_up(x, m):
    return (x + m - 1) // m * m


# ---------------------------------------------------------------------------
# Pass 1: dense -> relu -> LayerNorm core (gamma/beta folded downstream).
# ---------------------------------------------------------------------------
def transform_kernel(x_ref, w1_ref, b1_ref, h_ref, *, eps):
    h = jnp.dot(x_ref[...], w1_ref[...],
                preferred_element_type=jnp.float32)            # (tm, H) f32 acc
    h = jnp.maximum(h + b1_ref[...], 0.0)                      # bias + relu
    mean = jnp.mean(h, axis=-1, keepdims=True)
    centered = h - mean
    var = jnp.mean(centered * centered, axis=-1, keepdims=True)
    # Normalized only: LN's gamma/beta are folded into the decoder weights.
    h_ref[...] = (centered * jax.lax.rsqrt(var + eps)).astype(h_ref.dtype)


# ---------------------------------------------------------------------------
# Pass 2: decoder GEMM.  Grid = (vocab tiles OUTER, row tiles INNER) so each
# (H, tile_n) weight slab is fetched exactly once per call.
# ---------------------------------------------------------------------------
def decoder_kernel(h_ref, w_ref, bias_ref, o_ref):
    logits = jnp.dot(h_ref[...], w_ref[...],
                     preferred_element_type=jnp.float32)
    o_ref[...] = (logits + bias_ref[...]).astype(o_ref.dtype)


def pack_mlm_head_weights(params, *, tile_n=4096, compute_dtype=jnp.bfloat16):
    """One-time weight prep: transpose, concat, fold LN affine, pad vocab, cast."""
    H = params["dense1_w"].shape[0]
    V = params["decoder_bias"].shape[0]

    tile_n = min(tile_n, _round_up(V, 128))
    v_pad = _round_up(V, tile_n)

    # torch: cat([decoder.weight.t() (E,V), dense.weight (H-E,V)], dim=0) -> (H, V)
    w_cat = jnp.concatenate(
        [params["decoder_w"].astype(jnp.float32).T,
         params["dense2_w"].astype(jnp.float32)], axis=0)
    assert w_cat.shape == (H, V)

    gamma = params["ln_w"].astype(jnp.float32)
    beta = params["ln_b"].astype(jnp.float32)

    # Fold LayerNorm affine into the decoder:
    #   (h*gamma + beta) @ W + b == h @ (gamma[:,None]*W) + (beta @ W + b)
    w_scaled = gamma[:, None] * w_cat                                     # (H, V)
    bias = beta @ w_cat + params["decoder_bias"].astype(jnp.float32)      # (V,)

    w_scaled = jnp.pad(w_scaled, ((0, 0), (0, v_pad - V))).astype(compute_dtype)
    bias = jnp.pad(bias, (0, v_pad - V))

    return {
        "w1_t": params["dense1_w"].T.astype(compute_dtype),               # (H, H)
        "b1": params["dense1_b"].astype(jnp.float32).reshape(1, H),
        "w_cat": w_scaled,                                                # (H, v_pad)
        "bias": bias.astype(jnp.float32).reshape(1, v_pad),
        "vocab_size": V,
        "tile_n": tile_n,
        "compute_dtype": compute_dtype,
    }


def mobilebert_mlm_head(sequence_output, packed, *, eps=1e-12, tile_m=512,
                        out_dtype=None, vmem_limit_bytes=48 * 1024 * 1024):
    """sequence_output: (B, S, H) -> prediction scores (B, S, V).

    tile_m: 512 keeps the decoder GEMM comfortably past the compute/memory
    knee on v5e/v6e/v7x; 256 is enough on v5e.  out_dtype=jnp.bfloat16 halves
    the logits writeback if downstream tolerates it.
    """
    B, S, H = sequence_output.shape
    V = packed["vocab_size"]
    v_pad = packed["w_cat"].shape[1]
    tile_n = packed["tile_n"]
    compute_dtype = packed["compute_dtype"]
    out_dtype = sequence_output.dtype if out_dtype is None else out_dtype

    M = B * S
    tile_m = min(tile_m, _round_up(M, 16))   # 16: bf16 sublane packing
    m_pad = _round_up(M, tile_m)

    x2d = sequence_output.reshape(M, H).astype(compute_dtype)
    if m_pad != M:
        x2d = jnp.pad(x2d, ((0, m_pad - M), (0, 0)))

    n_row_tiles = m_pad // tile_m
    n_vocab_tiles = v_pad // tile_n

    # ---- pass 1: transform + LayerNorm (normalized h, compute dtype) ----
    h2d = pl.pallas_call(
        functools.partial(transform_kernel, eps=eps),
        out_shape=jax.ShapeDtypeStruct((m_pad, H), compute_dtype),
        grid_spec=pltpu.PrefetchScalarGridSpec(
            num_scalar_prefetch=0,
            grid=(n_row_tiles,),
            in_specs=[
                pl.BlockSpec((tile_m, H), lambda i: (i, 0)),   # x row tile
                pl.BlockSpec((H, H), lambda i: (0, 0)),        # W1^T (fetched once)
                pl.BlockSpec((1, H), lambda i: (0, 0)),        # b1   (fetched once)
            ],
            out_specs=pl.BlockSpec((tile_m, H), lambda i: (i, 0)),
        ),
        compiler_params=pltpu.CompilerParams(
            dimension_semantics=("parallel",),
            vmem_limit_bytes=vmem_limit_bytes),
    )(x2d, packed["w1_t"], packed["b1"])

    # ---- pass 2: decoder GEMM; weight streams exactly once per call ----
    out2d = pl.pallas_call(
        decoder_kernel,
        out_shape=jax.ShapeDtypeStruct((m_pad, v_pad), out_dtype),
        grid_spec=pltpu.PrefetchScalarGridSpec(
            num_scalar_prefetch=0,
            grid=(n_vocab_tiles, n_row_tiles),                 # vocab OUTER, rows INNER
            in_specs=[
                pl.BlockSpec((tile_m, H), lambda j, i: (i, 0)),     # h row tile
                pl.BlockSpec((H, tile_n), lambda j, i: (0, j)),     # weight slab (per j)
                pl.BlockSpec((1, tile_n), lambda j, i: (0, j)),     # folded bias tile
            ],
            out_specs=pl.BlockSpec((tile_m, tile_n), lambda j, i: (i, j)),
        ),
        compiler_params=pltpu.CompilerParams(
            dimension_semantics=("parallel", "parallel"),
            vmem_limit_bytes=vmem_limit_bytes),
    )(h2d, packed["w_cat"], packed["bias"])

    return out2d[:M, :V].reshape(B, S, V)


def init_params(key, hidden_size, embedding_size, vocab_size, dtype=jnp.float32):
    ks = jax.random.split(key, 7)
    std = 0.02
    return {
        # MobileBertPredictionHeadTransform (non-trivial LN affine to exercise
        # the gamma/beta folding path)
        "dense1_w": (jax.random.normal(ks[0], (hidden_size, hidden_size)) * std).astype(dtype),
        "dense1_b": (jax.random.normal(ks[1], (hidden_size,)) * 0.02).astype(dtype),
        "ln_w": (1.0 + 0.1 * jax.random.normal(ks[2], (hidden_size,))).astype(dtype),
        "ln_b": (0.05 * jax.random.normal(ks[3], (hidden_size,))).astype(dtype),
        # MobileBertLMPredictionHead
        "dense2_w": (jax.random.normal(ks[4], (hidden_size - embedding_size, vocab_size)) * std).astype(dtype),
        "decoder_w": (jax.random.normal(ks[5], (vocab_size, embedding_size)) * std).astype(dtype),
        "decoder_bias": (0.01 * jax.random.normal(ks[6], (vocab_size,))).astype(dtype),
    }


def reference_forward(x, params, eps=1e-12):
    """Plain-JAX reference mirroring the PyTorch module (no folding)."""
    h = x @ params["dense1_w"].T + params["dense1_b"]
    h = jnp.maximum(h, 0.0)
    mean = jnp.mean(h, axis=-1, keepdims=True)
    var = jnp.mean((h - mean) ** 2, axis=-1, keepdims=True)
    h = (h - mean) / jnp.sqrt(var + eps)
    h = h * params["ln_w"] + params["ln_b"]
    w_cat = jnp.concatenate([params["decoder_w"].T, params["dense2_w"]], axis=0)
    return h @ w_cat + params["decoder_bias"]


if __name__ == "__main__":
    # Small MobileBERT-like config; V=120 and M=18 exercise the padding paths.
    B, S = 2, 9
    hidden_size, embedding_size, vocab_size = 32, 16, 120

    key = jax.random.PRNGKey(0)
    k_in, k_params = jax.random.split(key)

    params = init_params(k_params, hidden_size, embedding_size, vocab_size)
    sequence_output = jax.random.normal(k_in, (B, S, hidden_size), jnp.float32)

    # Pack weights once (concat/transpose/LN-fold/pad hoisted out of forward).
    # f32 compute so the small-shape check is tight; use bf16 (and optionally
    # out_dtype=jnp.bfloat16) at real MobileBERT sizes.
    packed = pack_mlm_head_weights(params, tile_n=4096,
                                   compute_dtype=jnp.float32)

    scores = mobilebert_mlm_head(sequence_output, packed)
    scores = jax.block_until_ready(scores)

    ref = reference_forward(sequence_output, params)
    assert scores.shape == (B, S, vocab_size)
    # Tolerance allows for default (possibly bf16-pass) matmul precision and
    # the reassociation introduced by folding gamma/beta into the weights;
    # structural bugs would show up as O(0.1) errors on ~0.1-magnitude logits.
    max_err = float(jnp.max(jnp.abs(scores - ref)))
    assert jnp.allclose(scores, ref, atol=2e-3, rtol=2e-3), f"mismatch: {max_err}"

    print("KERNEL_OK")
</pallas_src>

<mosaic_0001>
module attributes {stable_mosaic.version = 11 : i64} {
  func.func @transform_kernel(%arg0: i32, %arg1: memref<32x32xf32, #tpu.memory_space<vmem>>, %arg2: memref<32x32xf32, #tpu.memory_space<vmem>>, %arg3: memref<1x32xf32, #tpu.memory_space<vmem>>, %arg4: memref<32x32xf32, #tpu.memory_space<vmem>>) attributes {dimension_semantics = [#tpu.dimension_semantics<parallel>], iteration_bounds = array<i64: 1>, scalar_prefetch = 0 : i64, scratch_operands = 0 : i64, tpu.core_type = #tpu.core_type<tc>, window_params = [{transform_indices = @transform_0, window_bounds = array<i64: 32, 32>}, {pipeline_mode = #tpu.pipeline_mode<synchronous>, transform_indices = @transform_1, window_bounds = array<i64: 32, 32>}, {pipeline_mode = #tpu.pipeline_mode<synchronous>, transform_indices = @transform_2, window_bounds = array<i64: 1, 32>}, {transform_indices = @transform_3, window_bounds = array<i64: 32, 32>}]} {
    %c0 = arith.constant 0 : index
    %c0_0 = arith.constant 0 : index
    %0 = vector.load %arg1[%c0, %c0_0] : memref<32x32xf32, #tpu.memory_space<vmem>>, vector<32x32xf32>
    %c0_1 = arith.constant 0 : index
    %c0_2 = arith.constant 0 : index
    %1 = vector.load %arg2[%c0_1, %c0_2] : memref<32x32xf32, #tpu.memory_space<vmem>>, vector<32x32xf32>
    %cst = arith.constant dense<0.000000e+00> : vector<32x32xf32>
    %2 = tpu.matmul %0, %1, %cst {dimension_numbers = #tpu.dot_dimension_numbers<[1], [0], [0], [1], [0, 0, 1, 1], [], []>} : vector<32x32xf32>, vector<32x32xf32>, vector<32x32xf32> -> vector<32x32xf32>
    %c0_3 = arith.constant 0 : index
    %c0_4 = arith.constant 0 : index
    %3 = vector.load %arg3[%c0_3, %c0_4] : memref<1x32xf32, #tpu.memory_space<vmem>>, vector<1x32xf32>
    %4 = vector.broadcast %3 : vector<1x32xf32> to vector<32x32xf32>
    %5 = arith.addf %2, %4 : vector<32x32xf32>
    %cst_5 = arith.constant 0.000000e+00 : f32
    %6 = vector.broadcast %cst_5 : f32 to vector<32x32xf32>
    %7 = arith.maximumf %5, %6 : vector<32x32xf32>
    %cst_6 = arith.constant dense<0.000000e+00> : vector<32xf32>
    %8 = vector.multi_reduction <add>, %7, %cst_6 [1] : vector<32x32xf32> to vector<32xf32>
    %9 = vector.shape_cast %8 : vector<32xf32> to vector<32x1xf32>
    %cst_7 = arith.constant 3.200000e+01 : f32
    %10 = vector.broadcast %cst_7 : f32 to vector<32x1xf32>
    %11 = arith.divf %9, %10 : vector<32x1xf32>
    %12 = vector.broadcast %11 : vector<32x1xf32> to vector<32x32xf32>
    %13 = arith.subf %7, %12 : vector<32x32xf32>
    %14 = arith.mulf %13, %13 : vector<32x32xf32>
    %cst_8 = arith.constant dense<0.000000e+00> : vector<32xf32>
    %15 = vector.multi_reduction <add>, %14, %cst_8 [1] : vector<32x32xf32> to vector<32xf32>
    %16 = vector.shape_cast %15 : vector<32xf32> to vector<32x1xf32>
    %cst_9 = arith.constant 3.200000e+01 : f32
    %17 = vector.broadcast %cst_9 : f32 to vector<32x1xf32>
    %18 = arith.divf %16, %17 : vector<32x1xf32>
    %cst_10 = arith.constant 9.99999996E-13 : f32
    %19 = vector.broadcast %cst_10 : f32 to vector<32x1xf32>
    %20 = arith.addf %18, %19 : vector<32x1xf32>
    %21 = math.rsqrt %20 : vector<32x1xf32>
    %22 = vector.broadcast %21 : vector<32x1xf32> to vector<32x32xf32>
    %23 = arith.mulf %13, %22 : vector<32x32xf32>
    %c0_11 = arith.constant 0 : index
    %c0_12 = arith.constant 0 : index
    %24 = vector.load %arg4[%c0_11, %c0_12] : memref<32x32xf32, #tpu.memory_space<vmem>>, vector<32x32xf32>
    tpu.vector_store %arg4[%c0_11, %c0_12], %23 {strides = array<i32>} : memref<32x32xf32, #tpu.memory_space<vmem>>, vector<32x32xf32>,
    return
  }
  func.func @transform_0(%arg0: i32) -> (i32, i32) {
    %c0_i32 = arith.constant 0 : i32
    %c0_i32_0 = arith.constant 0 : i32
    return %arg0, %c0_i32 : i32, i32
  }
  func.func @transform_1(%arg0: i32) -> (i32, i32) {
    %c0_i32 = arith.constant 0 : i32
    %c0_i32_0 = arith.constant 0 : i32
    %c0_i32_1 = arith.constant 0 : i32
    return %c0_i32, %c0_i32_0 : i32, i32
  }
  func.func @transform_2(%arg0: i32) -> (i32, i32) {
    %c0_i32 = arith.constant 0 : i32
    %c0_i32_0 = arith.constant 0 : i32
    %c0_i32_1 = arith.constant 0 : i32
    return %c0_i32, %c0_i32_0 : i32, i32
  }
  func.func @transform_3(%arg0: i32) -> (i32, i32) {
    %c0_i32 = arith.constant 0 : i32
    %c0_i32_0 = arith.constant 0 : i32
    return %arg0, %c0_i32 : i32, i32
  }
}

</mosaic_0001>

<bundles_post_ra>
// kernel: tpu_custom_call.1
= control target key start
LH: loop header
LB: loop body
LE: loop exit
PB: predicated region body
PF: predicated region fallthrough
CT: control target
= control target key end

     0   :  { %8 = vsyncpa [#allocation3], 0  ;;  %s448_s0 = inlined_call_operand.hbm [shape: f32[32,32], index: 0, kind: input, shape index: {}]   ;;  %s449_s1 = inlined_call_operand.hbm [shape: f32[32,32], index: 1, kind: input, shape index: {}]   ;;  %s450_s2 = inlined_call_operand.vmem [shape: f32[1,32], index: 2, kind: input, shape index: {}]   ;;  %s451_s3 = inlined_call_operand.hbm [shape: f32[32,32], index: 3, kind: output, shape index: {}]  }
   0x1   :  { %9 = vsyncpa [#allocation6], 0 }
   0x2   :  { %10 = vsyncpa [#allocation4], 0  ;;  %s359_s12 = smov [#allocation2]   ;;  %s287_s16 = scalar_lea.hbm %s448_s0, 512 }
   0x3   :  { %s16_s13 = sshll.u32 %s359_s12, 4  ;;  %p288_p0 = scmp.ne.s32.totalorder %s448_s0, %s287_s16  ;;  %s17_s13 = int_to_ptr.vmem [resolvable:$true] %s16_s13 }
   0x4   :  { %p291_p1 = scmp.lt.u32.totalorder %s287_s16, %s448_s0 }
   0x6   :  { %p293_p2 = pnand %p291_p1, %p288_p0 }
   0x8   :  { %296 = shalt.err (!%p293_p2)
}
   0x9   :  { %s297_s21 = scalar_lea.vmem %s17_s13, 512  ;;  %p302_p4 = scmp.lt.s32.totalorder %s17_s13, %s17_s13 }
   0xa   :  { %p298_p3 = scmp.ne.s32.totalorder %s17_s13, %s297_s21  ;;  %p303_p5 = scmp.lt.s32.totalorder %s297_s21, %s297_s21 }
   0xc   :  { %p304_p6 = por %p303_p5, %p302_p4 }
   0xe   :  { %p305_p7 = pnand %p304_p6, %p298_p3 }
  0x10   :  { %308 = shalt.err (!%p305_p7)
}
  0x11   :  { %s360_s22 = smov 128   ;;  %s361_s23 = smov 8  }
  0x12   :  { %22 = dma.hbm_to_vmem [thread:$0]  %s448_s0, 512, %s17_s13, [#allocation3], %s360_s22, %s360_s22, %s361_s23  }
  0x13   :  { %s362_s26 = smov [#allocation5]   ;;  %s309_s30 = scalar_lea.hbm %s449_s1, 512 }
  0x14   :  { %s28_s27 = sshll.u32 %s362_s26, 4  ;;  %p310_p8 = scmp.ne.s32.totalorder %s449_s1, %s309_s30  ;;  %s29_s27 = int_to_ptr.vmem [resolvable:$true] %s28_s27 }
  0x15   :  { %p313_p9 = scmp.lt.u32.totalorder %s309_s30, %s449_s1 }
  0x17   :  { %p315_p10 = pnand %p313_p9, %p310_p8 }
  0x19   :  { %318 = shalt.err (!%p315_p10)
}
  0x1a   :  { %s319_s8 = scalar_lea.vmem %s29_s27, 512  ;;  %p324_p12 = scmp.lt.s32.totalorder %s29_s27, %s29_s27 }
  0x1b   :  { %p320_p11 = scmp.ne.s32.totalorder %s29_s27, %s319_s8  ;;  %p325_p13 = scmp.lt.s32.totalorder %s319_s8, %s319_s8 }
  0x1d   :  { %p326_p0 = por %p325_p13, %p324_p12 }
  0x1f   :  { %p327_p1 = pnand %p326_p0, %p320_p11 }
  0x21   :  { %330 = shalt.err (!%p327_p1)
}
  0x22   :  { %34 = dma.hbm_to_vmem [thread:$0]  %s449_s1, 512, %s29_s27, [#allocation6], %s360_s22, %s360_s22, %s361_s23  }
  0x23   :  { %353 = dma.done.wait [#allocation3], 512  }
  0x24   :  { %354 = vsyncadd [#allocation3], 4294966784 }
  0x25   :  { %355 = dma.done.wait [#allocation6], 512  }
  0x26   :  { %356 = vsyncadd [#allocation6], 4294966784  ;;  %vm58_vm0 = vcmask 261120   ;;  %v47_v0 = vld [vmem:[#allocation5] sm:$0xff]  ;;  %v48_v1 = vld [vmem:[#allocation5 + $0x8] sm:$0xff] }
  0x27   :  { %v49_v2 = vld [vmem:[#allocation5 + $0x10] sm:$0xff]  ;;  %v262_v3 = vpack.c.bf16 %v48_v1, %v47_v0  ;;  %v50_v4 = vld [vmem:[#allocation5 + $0x18] sm:$0xff]  ;;  %v43_v5 = vld [vmem:[#allocation2] sm:$0xff] }
  0x28   :  { %v45_v6 = vld [vmem:[#allocation2 + $0x10] sm:$0xff]  ;;  %v266_v7 = vpack.c.bf16 %v50_v4, %v49_v2  ;;  %256 = vmatprep.mubr.msk.f32.mxu0 %vm58_vm0, %v43_v5  ;;  %v44_v8 = vld [vmem:[#allocation2 + $0x8] sm:$0xff]  ;;  %v46_v9 = vld [vmem:[#allocation2 + $0x18] sm:$0xff] }
  0x29   :  { %259 = vmatprep.mubr.msk.f32.mxu1 %vm58_vm0, %v45_v6  ;;  %263 = vmatprep.subr.bf16.mxu0 %v262_v3  ;;  %v235_v10 = vld [vmem:[%s450_s2] ss:$0 sm:$0xff]  ;;  %s363_s2 = smov [#allocation7]  }
  0x2a   :  { %270 = vmatprep.subr.bf16.mxu1 %v262_v3  ;;  %265 = vmatpush3.bf16.msra.mxu0 %v262_v3  ;;  %s222_s11 = sshll.u32 %s363_s2, 4  ;;  %s223_s11 = int_to_ptr.vmem [resolvable:$true] %s222_s11 }
  0x2b   :  { %272 = vmatpush3.bf16.msra.mxu1 %v262_v3  ;;  %267 = vmatprep.subr.bf16.mxu0 %v266_v7  ;;  %s331_s12 = scalar_lea.vmem %s223_s11, 512  ;;  %p336_p3 = scmp.lt.s32.totalorder %s223_s11, %s223_s11 }
  0x2c   :  { %271 = vmatprep.subr.bf16.mxu1 %v266_v7  ;;  %p332_p2 = scmp.ne.s32.totalorder %s223_s11, %s331_s12  ;;  %p337_p4 = scmp.lt.s32.totalorder %s331_s12, %s331_s12 }
  0x2e   :  { %269 = vmatpush3.bf16.msra.mxu0 %v266_v7  ;;  %p338_p5 = por %p337_p4, %p336_p3 }
  0x2f   :  { %273 = vmatpush3.bf16.msra.mxu1 %v266_v7 }
  0x30   :  { %p339_p6 = pnand %p338_p5, %p332_p2 }
  0x31   :  { %257 = vmatmul.mubr.msk.f32.vlgmr.msra.gmra.mrb[0].mxu0 %vm58_vm0, %v44_v8 }
  0x32   :  { %260 = vmatmul.mubr.msk.f32.vlgmr.msra.gmra.mrb[0].mxu1 %vm58_vm0, %v46_v9 }
 0x104   :  { %v258_v11 = vpop.f32.mrb[0].mxu0 }
 0x105   :  { %v261_v12 = vpop.f32.mrb[0].mxu1  ;;  %v137_v14 = vpop.f32.mrb[1].mxu0  ;;  %v143_v16 = vadd.f32 %v258_v11, %v235_v10 }
 0x106   :  { %v153_v13 = vadd.f32 %v261_v12, %v235_v10  ;;  %v147_v15 = vpop.f32.mrb[1].mxu1  ;;  %v138_v17 = vadd.f32 %v235_v10, %v137_v14 }
 0x107   :  { %v148_v18 = vadd.f32 %v235_v10, %v147_v15  ;;  %v157_v22 = vmax.f32 %v143_v16, 0.0 }
 0x108   :  { %v159_v19 = vmax.f32 %v153_v13, 0.0  ;;  %v156_v20 = vmax.f32 %v138_v17, 0.0 }
 0x109   :  { %v158_v21 = vmax.f32 %v148_v18, 0.0  ;;  %v163_v26 = vsel %vm58_vm0, %v157_v22, 0.0 }
 0x10a   :  { %v160_v24 = vsel %vm58_vm0, %v156_v20, 0.0  ;;  %v169_v25 = vsel %vm58_vm0, %v159_v19, 0.0 }
 0x10b   :  { %v166_v23 = vsel %vm58_vm0, %v158_v21, 0.0  ;;  %161 = vadd.xlane.f32.xlu0 %v160_v24 }
 0x10c   :  { %167 = vadd.xlane.f32.xlu1 %v166_v23 }
 0x10f   :  { %164 = vadd.xlane.f32.xlu0 %v163_v26 }
 0x110   :  { %170 = vadd.xlane.f32.xlu1 %v169_v25 }
 0x198   :  { %v162_v28 = vpop.xlane.xlu0 %161 }
 0x199   :  { %v168_v27 = vpop.xlane.xlu1 %167  ;;  %v173_v30 = vmul.f32 0.03125, %v162_v28 }
 0x19a   :  { %v175_v29 = vmul.f32 0.03125, %v168_v27 }
 0x19b   :  { %v177_v32 = vsub.f32 %v156_v20, %v173_v30 }
 0x19c   :  { %v179_v31 = vsub.f32 %v158_v21, %v175_v29  ;;  %v165_v34 = vpop.xlane.xlu0 %164 }
 0x19d   :  { %v171_v33 = vpop.xlane.xlu1 %170  ;;  %v174_v36 = vmul.f32 0.03125, %v165_v34  ;;  %v181_v37 = vmul.f32 %v177_v32, %v177_v32 }
 0x19e   :  { %v176_v35 = vmul.f32 0.03125, %v171_v33  ;;  %v183_v41 = vmul.f32 %v179_v31, %v179_v31 }
 0x19f   :  { %v178_v39 = vsub.f32 %v157_v22, %v174_v36  ;;  %v185_v40 = vsel %vm58_vm0, %v181_v37, 0.0 }
 0x1a0   :  { %v180_v38 = vsub.f32 %v159_v19, %v176_v35  ;;  %186 = vadd.xlane.f32.xlu0 %v185_v40  ;;  %v191_v43 = vsel %vm58_vm0, %v183_v41, 0.0 }
 0x1a1   :  { %v182_v42 = vmul.f32 %v178_v39, %v178_v39 }
 0x1a2   :  { %v184_v45 = vmul.f32 %v180_v38, %v180_v38 }
 0x1a3   :  { %v188_v44 = vsel %vm58_vm0, %v182_v42, 0.0 }
 0x1a4   :  { %192 = vadd.xlane.f32.xlu0 %v191_v43  ;;  %189 = vadd.xlane.f32.xlu1 %v188_v44  ;;  %v194_v46 = vsel %vm58_vm0, %v184_v45, 0.0 }
 0x1a8   :  { %195 = vadd.xlane.f32.xlu1 %v194_v46 }
 0x22d   :  { %v187_v47 = vpop.xlane.xlu0 %186 }
 0x22e   :  { %v197_v48 = vmul.f32 0.03125, %v187_v47 }
 0x230   :  { %v201_v49 = vadd.f32 1e-12, %v197_v48 }
 0x231   :  { %v190_v50 = vpop.xlane.xlu1 %189  ;;  %v193_v51 = vpop.xlane.xlu0 %192 }
 0x232   :  { %279 = vrsqrt.f32 %v201_v49  ;;  %v198_v52 = vmul.f32 0.03125, %v190_v50  ;;  %v199_v53 = vmul.f32 0.03125, %v193_v51 }
 0x234   :  { %v202_v54 = vadd.f32 1e-12, %v198_v52  ;;  %v203_v55 = vadd.f32 1e-12, %v199_v53 }
 0x235   :  { %v196_v56 = vpop.xlane.xlu1 %195 }
 0x236   :  { %281 = vrsqrt.f32 %v202_v54  ;;  %v200_v57 = vmul.f32 0.03125, %v196_v56 }
 0x237   :  { %283 = vrsqrt.f32 %v203_v55 }
 0x238   :  { %v204_v58 = vadd.f32 1e-12, %v200_v57 }
 0x23a   :  { %285 = vrsqrt.f32 %v204_v58 }
 0x23c   :  { %v280_v59 = vpop.eup %279 }
 0x23d   :  { %v209_v60 = vmul.f32 %v280_v59, %v177_v32 }
 0x23f   :  { %213 = vst.msk [vmem:[#allocation7] sm:$0xff] %vm58_vm0, %v209_v60 }
 0x240   :  { %v282_v61 = vpop.eup %281 }
 0x241   :  { %v284_v62 = vpop.eup %283  ;;  %v210_v63 = vmul.f32 %v282_v61, %v178_v39 }
 0x242   :  { %v211_v0 = vmul.f32 %v284_v62, %v179_v31 }
 0x243   :  { %214 = vst.msk [vmem:[#allocation7 + $0x8] sm:$0xff] %vm58_vm0, %v210_v63 }
 0x244   :  { %v286_v1 = vpop.eup %285  ;;  %215 = vst.msk [vmem:[#allocation7 + $0x10] sm:$0xff] %vm58_vm0, %v211_v0 }
 0x245   :  { %v212_v2 = vmul.f32 %v286_v1, %v180_v38 }
 0x247   :  { %216 = vst.msk [vmem:[#allocation7 + $0x18] sm:$0xff] %vm58_vm0, %v212_v2 }
 0x248   :  { %342 = shalt.err (!%p339_p6)
}
 0x249   :  { %s343_s15 = scalar_lea.hbm %s451_s3, 512 }
 0x24a   :  { %p344_p7 = scmp.ne.s32.totalorder %s451_s3, %s343_s15  ;;  %p347_p8 = scmp.lt.u32.totalorder %s343_s15, %s451_s3 }
 0x24c   :  { %p349_p9 = pnand %p347_p8, %p344_p7 }
 0x24e   :  { %352 = shalt.err (!%p349_p9)
}
 0x24f   :  { %228 = dma.vmem_to_hbm [thread:$0]  %s223_s11, 512, %s451_s3, [#allocation4], %s360_s22, %s360_s22, %s361_s23  }
 0x250   :  { %357 = dma.done.wait [#allocation4], 512  }
 0x251   :  { %358 = vsyncadd [#allocation4], 4294966784 }
 0x252   :  { %232 = vsyncpa [#allocation3], 1 }
 0x253   :  { %233 = vsyncpa [#allocation6], 1 }
 0x254   :  { %234 = vsyncpa [#allocation4], 1 }

</bundles_post_ra>
